<compile_context>
chip_gen: v7x
topology: tpu7x:2x2x1
jax: 0.10.0
libtpu: 0.0.40
codegen_flags: <defaults>
</compile_context>

<pallas_src>
from functools import partial

import jax
import jax.numpy as jnp
from jax.experimental import pallas as pl
from jax.experimental.pallas import tpu as pltpu

_MIB = 1024 * 1024


def _pick_tile(dim: int, max_tile: int, align: int) -> int:
    """Largest legal tile: full dim if it fits, else an `align`-multiple tile."""
    if dim <= max_tile:
        return dim                        # block == full array dim: always legal
    return (max_tile // align) * align    # aligned tile; ragged last block is masked


def _tile_budget():
    """(max_rows, max_lanes, vmem_limit_bytes) tuned per TPU generation."""
    # Defaults: ~2 MiB f32 tiles -> in+out double-buffered ~8.5 MiB, safe under
    # the default scoped VMEM on v5e (16 MiB) / v6e (32 MiB) and ~85% of the
    # HBM roofline there.
    tr_max, thw_max, vmem_limit = 256, 2048, None
    try:
        cap = pltpu.get_tpu_info().vmem_capacity_bytes
        # v7x-class TensorCore: 64 MiB VMEM, ~3.2 TB/s HBM -> bigger tiles
        # amortize the ~0.35 us per-grid-step overhead; raise scoped VMEM.
        if cap is not None and 48 * _MIB <= cap <= 64 * _MIB:
            tr_max, thw_max, vmem_limit = 512, 4096, 48 * _MIB
    except Exception:
        pass
    return tr_max, thw_max, vmem_limit


def _affine_kernel(x_ref, scale_ref, bias_ref, o_ref):
    # x_ref     : VMEM (TR, THW)
    # scale_ref : VMEM (TR, 1)   -- broadcast across lanes on the VPU
    # bias_ref  : VMEM (TR, 1)
    # Pure per-element FMA in the storage dtype; HBM-bandwidth bound.
    o_ref[...] = x_ref[...] * scale_ref[...] + bias_ref[...]


def _apply_fn_pallas(x, scale, bias):
    """fn(x) = per-channel affine, evaluated as a tiled streaming Pallas kernel."""
    N, C, H, W = x.shape
    R, HW = N * C, H * W

    tr_max, thw_max, vmem_limit = _tile_budget()
    TR = _pick_tile(R, tr_max, 8)
    THW = _pick_tile(HW, thw_max, 128)

    # Contiguous reshape (bitcast, no HBM copy).
    x2d = x.reshape(R, HW)

    # Row r = n*C + c  ->  per-row scale/bias = scale[c], bias[c].  Tiny arrays.
    scale_rows = jnp.tile(scale.astype(x.dtype), N).reshape(R, 1)
    bias_rows = jnp.tile(bias.astype(x.dtype), N).reshape(R, 1)

    n_r = pl.cdiv(R, TR)
    n_hw = pl.cdiv(HW, THW)

    # Put the larger-extent parallel axis outermost so the v7x megacore split
    # always has >=2 steps to shard (row axis is often tiny).  scale/bias
    # re-fetch when the inner axis is rows is negligible (~TR*4 bytes/step).
    if n_hw >= n_r:
        grid = (n_hw, n_r)
        x_map = lambda j, i: (i, j)
        sb_map = lambda j, i: (i, 0)
    else:
        grid = (n_r, n_hw)
        x_map = lambda i, j: (i, j)
        sb_map = lambda i, j: (i, 0)

    out2d = pl.pallas_call(
        _affine_kernel,
        out_shape=jax.ShapeDtypeStruct((R, HW), x.dtype),
        grid=grid,
        in_specs=[
            pl.BlockSpec((TR, THW), x_map),   # x tile
            pl.BlockSpec((TR, 1), sb_map),    # per-row scale
            pl.BlockSpec((TR, 1), sb_map),    # per-row bias
        ],
        out_specs=pl.BlockSpec((TR, THW), x_map),
        compiler_params=pltpu.CompilerParams(
            dimension_semantics=("parallel", "parallel"),
            vmem_limit_bytes=vmem_limit),
    )(x2d, scale_rows, bias_rows)

    return out2d.reshape(N, C, H, W)


@partial(jax.jit, donate_argnums=(0,))
def random_apply(x, scale, bias, key, p):
    """x: [N, C, H, W]. scale/bias: [C]. Returns (out, applied_flag).

    x is donated so the skip branch of the cond can alias the input buffer
    (true zero-copy skip) instead of re-writing x to a fresh output buffer.
    """
    # TODO(synk): PyTorch uses host-side random.random(); emulated with
    # jax.random here (apply iff u <= p, i.e. with probability p).
    u = jax.random.uniform(key, ())
    applied = u <= p

    out = jax.lax.cond(applied,
                       lambda t: _apply_fn_pallas(t, scale, bias),
                       lambda t: t, x)
    return out, applied


if __name__ == "__main__":
    key = jax.random.PRNGKey(0)
    kx, kgate = jax.random.split(key)

    N, C, H, W = 2, 4, 16, 16
    x = jax.random.uniform(kx, (N, C, H, W), dtype=jnp.float32)

    # Deterministic "fn" parameters (per-channel affine transform).
    scale = 1.0 + 0.1 * jnp.arange(C, dtype=jnp.float32)
    bias = 0.01 * jnp.arange(C, dtype=jnp.float32)
    p = 0.5

    # References / copies computed BEFORE x is donated to random_apply.
    fn_x = x * scale[None, :, None, None] + bias[None, :, None, None]
    x_keep = x + 0.0   # independent buffer, safe to use after donation

    # Sanity-check the Pallas fn path directly (independent of the gate).
    out_applied = jax.block_until_ready(_apply_fn_pallas(x, scale, bias))
    assert jnp.allclose(out_applied, fn_x, atol=1e-6), "fn path mismatch"

    # Gated call (donates x).
    out, applied = random_apply(x, scale, bias, kgate, p)
    out = jax.block_until_ready(out)

    ref = jnp.where(applied, fn_x, x_keep)
    assert jnp.allclose(out, ref, atol=1e-6), "mismatch vs reference"

    print("KERNEL_OK")
</pallas_src>

<mosaic_0001>
module attributes {stable_mosaic.version = 11 : i64} {
  func.func @_affine_kernel(%arg0: i32, %arg1: i32, %arg2: memref<8x256xf32, #tpu.memory_space<vmem>>, %arg3: memref<8x1xf32, #tpu.memory_space<vmem>>, %arg4: memref<8x1xf32, #tpu.memory_space<vmem>>, %arg5: memref<8x256xf32, #tpu.memory_space<vmem>>) attributes {dimension_semantics = [#tpu.dimension_semantics<parallel>, #tpu.dimension_semantics<parallel>], iteration_bounds = array<i64: 1, 1>, scalar_prefetch = 0 : i64, scratch_operands = 0 : i64, tpu.core_type = #tpu.core_type<tc>, window_params = [{transform_indices = @transform_0, window_bounds = array<i64: 8, 256>}, {transform_indices = @transform_1, window_bounds = array<i64: 8, 1>}, {transform_indices = @transform_2, window_bounds = array<i64: 8, 1>}, {transform_indices = @transform_3, window_bounds = array<i64: 8, 256>}]} {
    %c0 = arith.constant 0 : index
    %c0_0 = arith.constant 0 : index
    %0 = vector.load %arg2[%c0, %c0_0] : memref<8x256xf32, #tpu.memory_space<vmem>>, vector<8x256xf32>
    %c0_1 = arith.constant 0 : index
    %c0_2 = arith.constant 0 : index
    %1 = vector.load %arg3[%c0_1, %c0_2] : memref<8x1xf32, #tpu.memory_space<vmem>>, vector<8x1xf32>
    %2 = vector.broadcast %1 : vector<8x1xf32> to vector<8x256xf32>
    %3 = arith.mulf %0, %2 : vector<8x256xf32>
    %c0_3 = arith.constant 0 : index
    %c0_4 = arith.constant 0 : index
    %4 = vector.load %arg4[%c0_3, %c0_4] : memref<8x1xf32, #tpu.memory_space<vmem>>, vector<8x1xf32>
    %5 = vector.broadcast %4 : vector<8x1xf32> to vector<8x256xf32>
    %6 = arith.addf %3, %5 : vector<8x256xf32>
    %c0_5 = arith.constant 0 : index
    %c0_6 = arith.constant 0 : index
    %7 = vector.load %arg5[%c0_5, %c0_6] : memref<8x256xf32, #tpu.memory_space<vmem>>, vector<8x256xf32>
    tpu.vector_store %arg5[%c0_5, %c0_6], %6 {strides = array<i32>} : memref<8x256xf32, #tpu.memory_space<vmem>>, vector<8x256xf32>,
    return
  }
  func.func @transform_0(%arg0: i32, %arg1: i32) -> (i32, i32) {
    %c0_i32 = arith.constant 0 : i32
    return %arg1, %arg0 : i32, i32
  }
  func.func @transform_1(%arg0: i32, %arg1: i32) -> (i32, i32) {
    %c0_i32 = arith.constant 0 : i32
    %c0_i32_0 = arith.constant 0 : i32
    return %arg1, %c0_i32 : i32, i32
  }
  func.func @transform_2(%arg0: i32, %arg1: i32) -> (i32, i32) {
    %c0_i32 = arith.constant 0 : i32
    %c0_i32_0 = arith.constant 0 : i32
    return %arg1, %c0_i32 : i32, i32
  }
  func.func @transform_3(%arg0: i32, %arg1: i32) -> (i32, i32) {
    %c0_i32 = arith.constant 0 : i32
    return %arg1, %arg0 : i32, i32
  }
}

</mosaic_0001>

<bundles_post_ra>
// kernel: tpu_custom_call.1
= control target key start
LH: loop header
LB: loop body
LE: loop exit
PB: predicated region body
PF: predicated region fallthrough
CT: control target
= control target key end

     0   :  { %s122_s0 = inlined_call_operand.vmem [shape: f32[8,256], index: 0, kind: input, shape index: {}]   ;;  %s123_s1 = inlined_call_operand.vmem [shape: f32[8,1], index: 1, kind: input, shape index: {}]   ;;  %s124_s2 = inlined_call_operand.vmem [shape: f32[8,1], index: 2, kind: input, shape index: {}]   ;;  %s125_s3 = inlined_call_operand.hbm [shape: f32[8,256], index: 3, kind: output, shape index: {}]  }
   0x1   :  { %v17_v0 = vld [vmem:[%s123_s1] sm:$0xff] }
   0x2   :  { %8 = vsyncpa [#allocation3], 0  ;;  %v76_v1 = vmov 0   ;;  %v25_v2 = vld [vmem:[%s124_s2] sm:$0xff]  ;;  %v16_v5 = vld [vmem:[%s122_s0 + $0x8] sm:$0xff]  ;;  %s77_s20 = smov [#allocation2]  }
   0x3   :  { %51 = vset.pattern.permute.xlu0 %v76_v1  ;;  %v15_v4 = vld [vmem:[%s122_s0] sm:$0xff]  ;;  %s41_s1 = sshll.u32 %s77_s20, 4  ;;  %s42_s1 = int_to_ptr.vmem [resolvable:$true] %s41_s1 }
   0x4   :  { %20 = vperm.xlu0 %51, %v17_v0   ;;  %s52_s2 = scalar_lea.vmem %s42_s1, 256  ;;  %p57_p1 = scmp.lt.s32.totalorder %s42_s1, %s42_s1 }
   0x5   :  { %p53_p0 = scmp.ne.s32.totalorder %s42_s1, %s52_s2  ;;  %p58_p2 = scmp.lt.s32.totalorder %s52_s2, %s52_s2 }
   0x7   :  { %p59_p3 = por %p58_p2, %p57_p1 }
   0x8   :  { %28 = vperm.xlu0 %51, %v25_v2  }
   0x9   :  { %p60_p4 = pnand %p59_p3, %p53_p0 }
  0x83   :  { %v21_v3 = vpop.permute.xlu0 %20 }
  0x84   :  { %v23_v6 = vmul.f32 %v21_v3, %v15_v4  ;;  %v24_v7 = vmul.f32 %v21_v3, %v16_v5 }
  0x87   :  { %v29_v8 = vpop.permute.xlu0 %28 }
  0x88   :  { %v31_v9 = vadd.f32 %v29_v8, %v23_v6  ;;  %v32_v10 = vadd.f32 %v29_v8, %v24_v7 }
  0x8a   :  { %33 = vst [vmem:[#allocation2] sm:$0xff] %v31_v9  ;;  %34 = vst [vmem:[#allocation2 + $0x8] sm:$0xff] %v32_v10 }
  0x8b   :  { %63 = shalt.err (!%p60_p4)
}
  0x8c   :  { %s64_s0 = scalar_lea.hbm %s125_s3, 256 }
  0x8d   :  { %p65_p5 = scmp.ne.s32.totalorder %s125_s3, %s64_s0  ;;  %p68_p6 = scmp.lt.u32.totalorder %s64_s0, %s125_s3 }
  0x8f   :  { %p70_p7 = pnand %p68_p6, %p65_p5 }
  0x91   :  { %73 = shalt.err (!%p70_p7)
}
  0x92   :  { %44 = dma.vmem_to_hbm [thread:$0]  %s42_s1, 256, %s125_s3, [#allocation3]  }
  0x93   :  { %74 = dma.done.wait [#allocation3], 256  }
  0x94   :  { %75 = vsyncadd [#allocation3], 4294967040 }
  0x95   :  { %48 = vsyncpa [#allocation3], 1 }

</bundles_post_ra>
